<compile_context>
chip_gen: v7x
topology: tpu7x:2x2x1
jax: 0.10.0
libtpu: 0.0.40
codegen_flags: <defaults>
</compile_context>

<pallas_src>
import numpy as np
import jax
import jax.numpy as jnp
from jax.experimental import pallas as pl
from jax.experimental.pallas import tpu as pltpu


def _linear_tanh_kernel(w_ref, b_ref, xt_ref, ot_ref):
    """out_t[j, :] = tanh(sum_k W[j, k] * x_t[k, :] + b[j]).

    w_ref : (n_out * n_in,) f32 SMEM  -- torch layout, W[j, k] at index j*n_in+k
    b_ref : (n_out,)        f32 SMEM
    xt_ref: (n_in,  TB)     f32 VMEM  -- batch on the lane axis
    ot_ref: (n_out, TB)     f32 VMEM  -- batch on the lane axis
    """
    n_in = xt_ref.shape[0]
    n_out = ot_ref.shape[0]
    for j in range(n_out):
        # Bias folded into the init; each term is a scalar * lane-dense-vreg FMA.
        acc = xt_ref[0:1, :] * w_ref[j * n_in] + b_ref[j]
        for k in range(1, n_in):
            acc = acc + xt_ref[k:k + 1, :] * w_ref[j * n_in + k]
        ot_ref[j:j + 1, :] = jnp.tanh(acc).astype(ot_ref.dtype)   # tanh -> EUP slot


def ann_brain_forward(x, weight, bias, *, batch_tile=512):
    """Forward pass of annBrain: tanh(x @ W.T + b) (torch.nn.Linear semantics).

    x:      (B, n_in)     float32
    weight: (n_out, n_in) float32 (torch layout)
    bias:   (n_out,)      float32
    returns (B, n_out)    float32
    """
    B, n_in = x.shape
    n_out = weight.shape[0]

    w_flat = jnp.asarray(weight, jnp.float32).reshape(n_out * n_in)  # -> SMEM scalars
    b_vec = jnp.asarray(bias, jnp.float32).reshape(n_out)            # -> SMEM scalars
    xt = jnp.asarray(x, jnp.float32).T                               # (n_in, B): batch on lanes

    smem = pltpu.MemorySpace.SMEM
    vmem = pltpu.MemorySpace.VMEM
    out_shape = jax.ShapeDtypeStruct((n_out, B), jnp.float32)

    if B <= batch_tile or B % 128 != 0:
        # Whole problem is a single lane-dense VMEM block: gridless call, zero
        # grid-step / pipeline overhead.
        out_t = pl.pallas_call(
            _linear_tanh_kernel,
            out_shape=out_shape,
            in_specs=[
                pl.BlockSpec(memory_space=smem),   # W (flattened)
                pl.BlockSpec(memory_space=smem),   # bias
                pl.BlockSpec(memory_space=vmem),   # x^T
            ],
            out_specs=pl.BlockSpec(memory_space=vmem),
        )(w_flat, b_vec, xt)
    else:
        # Real batch sizes: 1-D "parallel" grid over lane-dense batch tiles
        # (multiple of 128 lanes) so DMAs double-buffer and, on v7x, both
        # TensorCores engage. Tiles this small stay far below scoped VMEM even
        # on v7x's 64 MiB, so no vmem_limit_bytes override is needed.
        tb = max(128, (batch_tile // 128) * 128)
        out_t = pl.pallas_call(
            _linear_tanh_kernel,
            out_shape=out_shape,
            grid=(pl.cdiv(B, tb),),
            in_specs=[
                pl.BlockSpec(memory_space=smem),                 # W, resident in SMEM
                pl.BlockSpec(memory_space=smem),                 # bias, resident in SMEM
                pl.BlockSpec((n_in, tb), lambda i: (0, i)),      # x^T batch tile
            ],
            out_specs=pl.BlockSpec((n_out, tb), lambda i: (0, i)),
            compiler_params=pltpu.CompilerParams(
                dimension_semantics=("parallel",),
            ),
        )(w_flat, b_vec, xt)

    return out_t.T   # back to torch's (B, n_out) layout


def make_brain_params(key):
    """Deterministic parameter init mirroring init_brainA1 (branch ii == 1):
    base matrix/bias + N(0, 0.01) perturbation drawn from a fixed JAX key."""
    base_w = jnp.array(
        [[0.2195, 1.8272, 0.1061],
         [0.6854, 0.7245, -0.3855],
         [0.6534, 0.3376, 0.165]],
        dtype=jnp.float32,
    )
    base_b = jnp.array([-0.1455, 0.063, 0.1198], dtype=jnp.float32)
    kw, kb = jax.random.split(key)
    w = base_w + 0.01 * jax.random.normal(kw, (3, 3), dtype=jnp.float32)
    b = base_b + 0.01 * jax.random.normal(kb, (3,), dtype=jnp.float32)
    return w, b


if __name__ == "__main__":
    key = jax.random.PRNGKey(0)
    k_x1, k_x2, k_p = jax.random.split(key, 3)

    n_input, n_output = 3, 3
    weight, bias = make_brain_params(k_p)

    # Small batch -> gridless path, single lane-dense (3, 128) block.
    x_small = jax.random.normal(k_x1, (128, n_input), dtype=jnp.float32)
    out_small = jax.block_until_ready(ann_brain_forward(x_small, weight, bias))
    ref_small = jnp.tanh(x_small @ weight.T + bias)
    np.testing.assert_allclose(np.asarray(out_small), np.asarray(ref_small),
                               rtol=1e-5, atol=1e-5)

    # Larger batch -> "parallel" batch-grid path with 256-lane tiles.
    x_big = jax.random.normal(k_x2, (1024, n_input), dtype=jnp.float32)
    out_big = jax.block_until_ready(
        ann_brain_forward(x_big, weight, bias, batch_tile=256))
    ref_big = jnp.tanh(x_big @ weight.T + bias)
    np.testing.assert_allclose(np.asarray(out_big), np.asarray(ref_big),
                               rtol=1e-5, atol=1e-5)

    print("KERNEL_OK")
</pallas_src>

<mosaic_0001>
module attributes {stable_mosaic.version = 11 : i64} {
  func.func @_linear_tanh_kernel(%arg0: memref<9xf32, #tpu.memory_space<smem>>, %arg1: memref<3xf32, #tpu.memory_space<smem>>, %arg2: memref<3x128xf32, #tpu.memory_space<vmem>>, %arg3: memref<3x128xf32, #tpu.memory_space<vmem>>) attributes {dimension_semantics = [], scalar_prefetch = 0 : i64, scratch_operands = 0 : i64, tpu.core_type = #tpu.core_type<tc>} {
    %c0 = arith.constant 0 : index
    %c0_0 = arith.constant 0 : index
    %0 = vector.load %arg2[%c0, %c0_0] : memref<3x128xf32, #tpu.memory_space<vmem>>, vector<1x128xf32>
    %c0_1 = arith.constant 0 : index
    %1 = memref.load %arg0[%c0_1] : memref<9xf32, #tpu.memory_space<smem>>
    %2 = vector.broadcast %1 : f32 to vector<1x128xf32>
    %3 = arith.mulf %0, %2 : vector<1x128xf32>
    %c0_2 = arith.constant 0 : index
    %4 = memref.load %arg1[%c0_2] : memref<3xf32, #tpu.memory_space<smem>>
    %5 = vector.broadcast %4 : f32 to vector<1x128xf32>
    %6 = arith.addf %3, %5 : vector<1x128xf32>
    %c1 = arith.constant 1 : index
    %c0_3 = arith.constant 0 : index
    %7 = vector.load %arg2[%c1, %c0_3] : memref<3x128xf32, #tpu.memory_space<vmem>>, vector<1x128xf32>
    %c1_4 = arith.constant 1 : index
    %8 = memref.load %arg0[%c1_4] : memref<9xf32, #tpu.memory_space<smem>>
    %9 = vector.broadcast %8 : f32 to vector<1x128xf32>
    %10 = arith.mulf %7, %9 : vector<1x128xf32>
    %11 = arith.addf %6, %10 : vector<1x128xf32>
    %c2 = arith.constant 2 : index
    %c0_5 = arith.constant 0 : index
    %12 = vector.load %arg2[%c2, %c0_5] : memref<3x128xf32, #tpu.memory_space<vmem>>, vector<1x128xf32>
    %c2_6 = arith.constant 2 : index
    %13 = memref.load %arg0[%c2_6] : memref<9xf32, #tpu.memory_space<smem>>
    %14 = vector.broadcast %13 : f32 to vector<1x128xf32>
    %15 = arith.mulf %12, %14 : vector<1x128xf32>
    %16 = arith.addf %11, %15 : vector<1x128xf32>
    %17 = math.tanh %16 : vector<1x128xf32>
    %c0_7 = arith.constant 0 : index
    %c0_8 = arith.constant 0 : index
    %18 = vector.load %arg3[%c0_7, %c0_8] : memref<3x128xf32, #tpu.memory_space<vmem>>, vector<1x128xf32>
    tpu.vector_store %arg3[%c0_7, %c0_8], %17 {strides = array<i32>} : memref<3x128xf32, #tpu.memory_space<vmem>>, vector<1x128xf32>,
    %c0_9 = arith.constant 0 : index
    %c0_10 = arith.constant 0 : index
    %19 = vector.load %arg2[%c0_9, %c0_10] : memref<3x128xf32, #tpu.memory_space<vmem>>, vector<1x128xf32>
    %c3 = arith.constant 3 : index
    %20 = memref.load %arg0[%c3] : memref<9xf32, #tpu.memory_space<smem>>
    %21 = vector.broadcast %20 : f32 to vector<1x128xf32>
    %22 = arith.mulf %19, %21 : vector<1x128xf32>
    %c1_11 = arith.constant 1 : index
    %23 = memref.load %arg1[%c1_11] : memref<3xf32, #tpu.memory_space<smem>>
    %24 = vector.broadcast %23 : f32 to vector<1x128xf32>
    %25 = arith.addf %22, %24 : vector<1x128xf32>
    %c1_12 = arith.constant 1 : index
    %c0_13 = arith.constant 0 : index
    %26 = vector.load %arg2[%c1_12, %c0_13] : memref<3x128xf32, #tpu.memory_space<vmem>>, vector<1x128xf32>
    %c4 = arith.constant 4 : index
    %27 = memref.load %arg0[%c4] : memref<9xf32, #tpu.memory_space<smem>>
    %28 = vector.broadcast %27 : f32 to vector<1x128xf32>
    %29 = arith.mulf %26, %28 : vector<1x128xf32>
    %30 = arith.addf %25, %29 : vector<1x128xf32>
    %c2_14 = arith.constant 2 : index
    %c0_15 = arith.constant 0 : index
    %31 = vector.load %arg2[%c2_14, %c0_15] : memref<3x128xf32, #tpu.memory_space<vmem>>, vector<1x128xf32>
    %c5 = arith.constant 5 : index
    %32 = memref.load %arg0[%c5] : memref<9xf32, #tpu.memory_space<smem>>
    %33 = vector.broadcast %32 : f32 to vector<1x128xf32>
    %34 = arith.mulf %31, %33 : vector<1x128xf32>
    %35 = arith.addf %30, %34 : vector<1x128xf32>
    %36 = math.tanh %35 : vector<1x128xf32>
    %c1_16 = arith.constant 1 : index
    %c0_17 = arith.constant 0 : index
    %37 = vector.load %arg3[%c1_16, %c0_17] : memref<3x128xf32, #tpu.memory_space<vmem>>, vector<1x128xf32>
    tpu.vector_store %arg3[%c1_16, %c0_17], %36 {strides = array<i32>} : memref<3x128xf32, #tpu.memory_space<vmem>>, vector<1x128xf32>,
    %c0_18 = arith.constant 0 : index
    %c0_19 = arith.constant 0 : index
    %38 = vector.load %arg2[%c0_18, %c0_19] : memref<3x128xf32, #tpu.memory_space<vmem>>, vector<1x128xf32>
    %c6 = arith.constant 6 : index
    %39 = memref.load %arg0[%c6] : memref<9xf32, #tpu.memory_space<smem>>
    %40 = vector.broadcast %39 : f32 to vector<1x128xf32>
    %41 = arith.mulf %38, %40 : vector<1x128xf32>
    %c2_20 = arith.constant 2 : index
    %42 = memref.load %arg1[%c2_20] : memref<3xf32, #tpu.memory_space<smem>>
    %43 = vector.broadcast %42 : f32 to vector<1x128xf32>
    %44 = arith.addf %41, %43 : vector<1x128xf32>
    %c1_21 = arith.constant 1 : index
    %c0_22 = arith.constant 0 : index
    %45 = vector.load %arg2[%c1_21, %c0_22] : memref<3x128xf32, #tpu.memory_space<vmem>>, vector<1x128xf32>
    %c7 = arith.constant 7 : index
    %46 = memref.load %arg0[%c7] : memref<9xf32, #tpu.memory_space<smem>>
    %47 = vector.broadcast %46 : f32 to vector<1x128xf32>
    %48 = arith.mulf %45, %47 : vector<1x128xf32>
    %49 = arith.addf %44, %48 : vector<1x128xf32>
    %c2_23 = arith.constant 2 : index
    %c0_24 = arith.constant 0 : index
    %50 = vector.load %arg2[%c2_23, %c0_24] : memref<3x128xf32, #tpu.memory_space<vmem>>, vector<1x128xf32>
    %c8 = arith.constant 8 : index
    %51 = memref.load %arg0[%c8] : memref<9xf32, #tpu.memory_space<smem>>
    %52 = vector.broadcast %51 : f32 to vector<1x128xf32>
    %53 = arith.mulf %50, %52 : vector<1x128xf32>
    %54 = arith.addf %49, %53 : vector<1x128xf32>
    %55 = math.tanh %54 : vector<1x128xf32>
    %c2_25 = arith.constant 2 : index
    %c0_26 = arith.constant 0 : index
    %56 = vector.load %arg3[%c2_25, %c0_26] : memref<3x128xf32, #tpu.memory_space<vmem>>, vector<1x128xf32>
    tpu.vector_store %arg3[%c2_25, %c0_26], %55 {strides = array<i32>} : memref<3x128xf32, #tpu.memory_space<vmem>>, vector<1x128xf32>,
    return
  }
}

</mosaic_0001>

<bundles_post_ra>
// kernel: tpu_custom_call.1
= control target key start
LH: loop header
LB: loop body
LE: loop exit
PB: predicated region body
PF: predicated region fallthrough
CT: control target
= control target key end

     0   :  { %8 = vsyncpa [#allocation4], 0  ;;  %s266_s0 = inlined_call_operand.hbm [shape: f32[9], index: 0, kind: input, shape index: {}]   ;;  %s267_s1 = inlined_call_operand.vmem [shape: f32[3], index: 1, kind: input, shape index: {}]   ;;  %s268_s2 = inlined_call_operand.vmem [shape: f32[3,128], index: 2, kind: input, shape index: {}]   ;;  %s269_s3 = inlined_call_operand.hbm [shape: f32[3,128], index: 3, kind: output, shape index: {}]  }
   0x1   :  { %9 = vsyncpa [#allocation5], 0 }
   0x2   :  { %10 = vsyncpa [#allocation3], 0  ;;  %s25_s14 = sshll.u32 %s267_s1, 4  ;;  %s130_s17 = scalar_lea.hbm %s266_s0, 16  ;;  %s26_s14 = int_to_ptr.vmem [resolvable:$true] %s25_s14 }
   0x3   :  { %p131_p0 = scmp.ne.s32.totalorder %s266_s0, %s130_s17  ;;  %p134_p1 = scmp.lt.u32.totalorder %s130_s17, %s266_s0 }
   0x5   :  { %p136_p2 = pnand %p134_p1, %p131_p0 }
   0x7   :  { %139 = shalt.err (!%p136_p2)
}
   0x8   :  { %s180_s22 = smov [#allocation2]   ;;  %s140_s1 = scalar_lea.vmem %s26_s14, 16 }
   0x9   :  { %18 = dma.hbm_to_smem %s266_s0, 16, %s180_s22, [#allocation4]  }
   0xa   :  { %p141_p3 = scmp.ne.s32.totalorder %s26_s14, %s140_s1  ;;  %p145_p4 = scmp.lt.s32.totalorder %s26_s14, %s26_s14 }
   0xb   :  { %p146_p5 = scmp.lt.s32.totalorder %s140_s1, %s140_s1 }
   0xd   :  { %p147_p6 = por %p146_p5, %p145_p4 }
   0xf   :  { %p148_p7 = pnand %p147_p6, %p141_p3 }
  0x11   :  { %151 = shalt.err (!%p148_p7)
}
  0x12   :  { %s181_s25 = smov [#allocation6]  }
  0x13   :  { %28 = dma.vmem_to_smem %s26_s14, 16, %s181_s25, [#allocation5]  }
  0x14   :  { %174 = dma.done.wait [#allocation4], 16  }
  0x15   :  { %175 = vsyncadd [#allocation4], 4294967280 }
  0x16   :  { %176 = dma.done.wait [#allocation5], 16  }
  0x17   :  { %177 = vsyncadd [#allocation5], 4294967280 }
  0x18   :  { %37 = sfence }
  0x19   :  { %s39_s26 = sld [smem:[#allocation2]]  ;;  %s111_s28 = sld [smem:[#allocation2 + $0x1]]  ;;  %v38_v0 = vld [vmem:[%s268_s2] sm:$0x1]  ;;  %v45_v1 = vld [vmem:[%s268_s2 + $0x1] sm:$0x1] }
  0x1a   :  { %s42_s27 = sld [smem:[#allocation6]]  ;;  %s112_s29 = sld [smem:[#allocation2 + $0x2]]  ;;  %v50_v2 = vld [vmem:[%s268_s2 + $0x2] sm:$0x1]  ;;  %v57_v5 = vld [vmem:[%s268_s2] sm:$0x1] }
  0x1b   :  { %s113_s0 = sld [smem:[#allocation2 + $0x3]]  ;;  %s114_s30 = sld [smem:[#allocation6 + $0x1]]  ;;  %v64_v11 = vld [vmem:[%s268_s2 + $0x1] sm:$0x1]  ;;  %v69_v12 = vld [vmem:[%s268_s2 + $0x2] sm:$0x1] }
  0x1c   :  { %s115_s4 = sld [smem:[#allocation2 + $0x4]]  ;;  %s116_s9 = sld [smem:[#allocation2 + $0x5]]  ;;  %v76_v19 = vld [vmem:[%s268_s2] sm:$0x1]  ;;  %v83_v20 = vld [vmem:[%s268_s2 + $0x1] sm:$0x1] }
  0x1d   :  { %s227_s12 = sld [smem:[#allocation2 + $0x6]]  ;;  %s229_s13 = sld [smem:[#allocation6 + $0x2]]  ;;  %v88_v25 = vld [vmem:[%s268_s2 + $0x2] sm:$0x1] }
  0x1e   :  { %s119_s16 = sld [smem:[#allocation2 + $0x7]]  ;;  %s234_s17 = sld [smem:[#allocation2 + $0x8]] }
  0x1f   :  { %v40_v3 = vstv %s39_s26  ;;  %v47_v7 = vstv %s111_s28  ;;  %s182_s2 = smov [#allocation7]  }
  0x20   :  { %v43_v4 = vstv %s42_s27  ;;  %v41_v6 = vmul.f32 %v40_v3, %v38_v0  ;;  %v48_v8 = vmul.f32 %v47_v7, %v45_v1  ;;  %v52_v9 = vstv %s112_s29  ;;  %s101_s27 = sshll.u32 %s182_s2, 4  ;;  %s102_s27 = int_to_ptr.vmem [resolvable:$true] %s101_s27 }
  0x21   :  { %v59_v10 = vstv %s113_s0  ;;  %v53_v14 = vmul.f32 %v52_v9, %v50_v2  ;;  %v62_v16 = vstv %s114_s30  ;;  %s152_s28 = scalar_lea.vmem %s102_s27, 64  ;;  %p157_p9 = scmp.lt.s32.totalorder %s102_s27, %s102_s27 }
  0x22   :  { %v44_v13 = vadd.f32 %v43_v4, %v41_v6  ;;  %v60_v15 = vmul.f32 %v59_v10, %v57_v5  ;;  %v66_v17 = vstv %s115_s4  ;;  %v71_v18 = vstv %s116_s9  ;;  %p153_p8 = scmp.ne.s32.totalorder %s102_s27, %s152_s28  ;;  %p158_p10 = scmp.lt.s32.totalorder %s152_s28, %s152_s28 }
  0x23   :  { %v67_v23 = vmul.f32 %v66_v17, %v64_v11  ;;  %v72_v24 = vmul.f32 %v71_v18, %v69_v12  ;;  %v78_v26 = vstv %s227_s12  ;;  %v81_v27 = vstv %s229_s13 }
  0x24   :  { %v49_v21 = vadd.f32 %v48_v8, %v44_v13  ;;  %v63_v22 = vadd.f32 %v62_v16, %v60_v15  ;;  %v85_v28 = vstv %s119_s16  ;;  %v90_v29 = vstv %s234_s17  ;;  %p159_p11 = por %p158_p10, %p157_p9 }
  0x25   :  { %v79_v32 = vmul.f32 %v78_v26, %v76_v19  ;;  %v86_v33 = vmul.f32 %v85_v28, %v83_v20  ;;  %v91_v36 = vmul.f32 %v90_v29, %v88_v25 }
  0x26   :  { %v54_v30 = vadd.f32 %v53_v14, %v49_v21  ;;  %v68_v31 = vadd.f32 %v67_v23, %v63_v22  ;;  %p160_p12 = pnand %p159_p11, %p153_p8 }
  0x27   :  { %v82_v35 = vadd.f32 %v81_v27, %v79_v32 }
  0x28   :  { %124 = vtanh.f32 %v54_v30  ;;  %v73_v34 = vadd.f32 %v72_v24, %v68_v31 }
  0x29   :  { %v87_v37 = vadd.f32 %v86_v33, %v82_v35 }
  0x2a   :  { %126 = vtanh.f32 %v73_v34 }
  0x2b   :  { %v92_v38 = vadd.f32 %v91_v36, %v87_v37 }
  0x2d   :  { %128 = vtanh.f32 %v92_v38 }
  0x32   :  { %v125_v39 = vpop.eup %124 }
  0x33   :  { %56 = vst [vmem:[#allocation7] sm:$0x1] %v125_v39 }
  0x34   :  { %v127_v40 = vpop.eup %126 }
  0x35   :  { %75 = vst [vmem:[#allocation7 + $0x1] sm:$0x1] %v127_v40 }
  0x37   :  { %v129_v41 = vpop.eup %128 }
  0x38   :  { %94 = vst [vmem:[#allocation7 + $0x2] sm:$0x1] %v129_v41 }
  0x39   :  { %163 = shalt.err (!%p160_p12)
}
  0x3a   :  { %s164_s30 = scalar_lea.hbm %s269_s3, 64 }
  0x3b   :  { %p165_p13 = scmp.ne.s32.totalorder %s269_s3, %s164_s30  ;;  %p168_p0 = scmp.lt.u32.totalorder %s164_s30, %s269_s3 }
  0x3d   :  { %p170_p1 = pnand %p168_p0, %p165_p13 }
  0x3f   :  { %173 = shalt.err (!%p170_p1)
}
  0x40   :  { %104 = dma.vmem_to_hbm [thread:$0]  %s102_s27, 64, %s269_s3, [#allocation3]  }
  0x41   :  { %178 = dma.done.wait [#allocation3], 64  }
  0x42   :  { %179 = vsyncadd [#allocation3], 4294967232 }
  0x43   :  { %108 = vsyncpa [#allocation3], 1 }
  0x44   :  { %109 = vsyncpa [#allocation4], 1 }
  0x45   :  { %110 = vsyncpa [#allocation5], 1 }

</bundles_post_ra>
